<compile_context>
chip_gen: v5e
topology: v5e:2x2
jax: 0.10.0
libtpu: 0.0.40
codegen_flags: <defaults>
</compile_context>

<pallas_src>
import jax
import jax.numpy as jnp
from jax import lax
from jax.experimental import pallas as pl
from jax.experimental.pallas import tpu as pltpu


def bow_nn_kernel(idsT_ref, embw1T_ref, b1_ref, w2_ref, b2_ref, outT_ref):
    # Shapes (per grid step):
    #   idsT_ref  : (L, SB)  int32   token ids, lane = sentence
    #   embw1T_ref: (H, V)   bf16    (W1 @ emb^T), resident
    #   b1_ref    : (H, 1)   f32
    #   w2_ref    : (O, H)   bf16    resident
    #   b2_ref    : (O, 1)   f32
    #   outT_ref  : (O, SB)  f32     lane = sentence (dense, unmasked stores)
    V = embw1T_ref.shape[1]
    L = idsT_ref.shape[0]
    SB = outT_ref.shape[1]

    # ---- Bag-of-words as a transposed count matrix (vectorized VPU work) ----
    ids_t = idsT_ref[...]                                       # (L, SB)
    iota_v = lax.broadcasted_iota(jnp.int32, (V, SB), 0)        # sublane = vocab id
    counts = jnp.zeros((V, SB), jnp.float32)
    for l in range(L):          # L is small & static -> unrolled VPU compares
        counts = counts + (iota_v == ids_t[l:l + 1, :]).astype(jnp.float32)
    # ids outside [0, V) (incl. the batch-padding sentinel) match nothing.

    # ---- MLP, embedding folded into first linear; native (M,K)@(K,N) ----
    # h^T = (W1 @ emb^T) @ counts^T         -> (H, SB), f32 accumulate on MXU
    h = jnp.dot(embw1T_ref[...], counts.astype(jnp.bfloat16),
                preferred_element_type=jnp.float32)
    h = jnp.maximum(h + b1_ref[...], 0.0)                       # ReLU, lane-bcast bias

    # out^T = W2 @ h^T                      -> (O, SB)
    out = jnp.dot(w2_ref[...], h.astype(jnp.bfloat16),
                  preferred_element_type=jnp.float32)
    outT_ref[...] = out + b2_ref[...]


def prepare_bow_nn_params(emb, w1, b1, w2, b2):
    """One-time (per model) preprocessing of the weights.

    Folds the embedding table through the first linear (exact by linearity of
    the BoW sum, up to rounding) and lays everything out for the kernel's
    transposed compute.  Call once and reuse across forward calls.
    """
    H = w1.shape[0]
    O = w2.shape[0]
    # (H, V) = W1 (H,E) contracted with emb (V,E) on E — no explicit .T.
    embw1_T = lax.dot_general(w1.astype(jnp.float32), emb.astype(jnp.float32),
                              (((1,), (1,)), ((), ())),
                              preferred_element_type=jnp.float32)
    return {
        "embw1_T": embw1_T.astype(jnp.bfloat16),          # (H, V) bf16
        "b1": b1.reshape(H, 1).astype(jnp.float32),       # (H, 1)
        "w2": w2.astype(jnp.bfloat16),                    # (O, H) bf16
        "b2": b2.reshape(O, 1).astype(jnp.float32),       # (O, 1)
    }


def bow_nn_forward(ids, params, *, sentence_block=128):
    """ids: (B, L) int32 token indices; params: output of prepare_bow_nn_params.

    sentence_block: 128 fills a v5e MXU; use 256 on v6e/v7x for larger batches
    (keep it a multiple of 128, and keep B_pad // SB >= 2 on v7x so both
    TensorCores get work).
    """
    embw1_T = params["embw1_T"]
    b1 = params["b1"]
    w2 = params["w2"]
    b2 = params["b2"]

    B, L = ids.shape
    H, V = embw1_T.shape
    O = w2.shape[0]

    SB = sentence_block
    B_pad = pl.cdiv(B, SB) * SB
    grid = (B_pad // SB,)

    # Transpose ids to (L, B_pad) so the lane axis is the sentence axis, and
    # pad the batch with a sentinel id (== V) that matches no vocab entry.
    ids_t = jnp.full((L, B_pad), V, dtype=jnp.int32)
    ids_t = ids_t.at[:, :B].set(ids.astype(jnp.int32).T)

    cost = pl.CostEstimate(
        flops=2 * B_pad * V * H + 2 * B_pad * H * O,
        transcendentals=0,
        bytes_accessed=(ids_t.size * 4 + embw1_T.size * 2 + w2.size * 2
                        + (H + O) * 4 + O * B_pad * 4),
    )

    out_t = pl.pallas_call(
        bow_nn_kernel,
        out_shape=jax.ShapeDtypeStruct((O, B_pad), jnp.float32),
        grid_spec=pltpu.PrefetchScalarGridSpec(
            num_scalar_prefetch=0,
            grid=grid,
            in_specs=[
                pl.BlockSpec((L, SB), lambda i: (0, i)),   # token ids tile
                pl.BlockSpec((H, V), lambda i: (0, 0)),    # W1 @ emb^T (resident)
                pl.BlockSpec((H, 1), lambda i: (0, 0)),    # b1
                pl.BlockSpec((O, H), lambda i: (0, 0)),    # W2 (resident)
                pl.BlockSpec((O, 1), lambda i: (0, 0)),    # b2
            ],
            out_specs=pl.BlockSpec((O, SB), lambda i: (0, i)),
        ),
        compiler_params=pltpu.CompilerParams(
            dimension_semantics=("parallel",)),            # independent sentence blocks
        cost_estimate=cost,
    )(ids_t, embw1_T, b1, w2, b2)

    # Un-transpose and drop batch padding (tiny host-side op).
    return out_t[:, :B].T


if __name__ == "__main__":
    # Small shapes implied by the module:
    #   vocab (emb_dim) = 32, embedding dim = 300 (fixed in module),
    #   input_size = 300, hidden_size = 32, output_size = 8,
    #   batch = 2 sentences, seq = 8 words each.
    B, L = 2, 8
    V, E = 32, 300
    H, O = 32, 8

    key = jax.random.PRNGKey(0)
    k_ids, k_emb, k_w1, k_b1, k_w2, k_b2 = jax.random.split(key, 6)

    # TODO(synk): word->index dict lookup and #UNK# handling are host-side
    # string processing with no Pallas equivalent; ids are assumed resolved
    # (any OOV token must already be mapped to the #UNK# index inside [0, V)).
    ids = jax.random.randint(k_ids, (B, L), 0, V, dtype=jnp.int32)
    emb = jax.random.normal(k_emb, (V, E), dtype=jnp.float32) * 0.1
    w1 = jax.random.normal(k_w1, (H, E), dtype=jnp.float32) * 0.05   # first_linear.weight
    b1 = jax.random.normal(k_b1, (H,), dtype=jnp.float32) * 0.05     # first_linear.bias
    w2 = jax.random.normal(k_w2, (O, H), dtype=jnp.float32) * 0.05   # second_linear.weight
    b2 = jax.random.normal(k_b2, (O,), dtype=jnp.float32) * 0.05     # second_linear.bias

    # Weight preprocessing done ONCE (amortized across forward calls).
    params = prepare_bow_nn_params(emb, w1, b1, w2, b2)

    out = bow_nn_forward(ids, params)
    out = jax.block_until_ready(out)

    # Pure-JAX f32 reference of the same forward pass.
    bow_ref = jnp.take(emb, ids, axis=0).sum(axis=1)                 # (B, E)
    h_ref = jnp.maximum(bow_ref @ w1.T + b1, 0.0)
    ref = h_ref @ w2.T + b2

    assert out.shape == (B, O)
    # bf16 MXU operands (f32 accumulation) -> relaxed tolerance vs f32 ref.
    assert jnp.allclose(out, ref, atol=1e-2, rtol=1e-2), "mismatch vs reference"
    print("KERNEL_OK")
</pallas_src>

<mosaic_0001>
module attributes {stable_mosaic.version = 11 : i64} {
  func.func @bow_nn_kernel(%arg0: i32, %arg1: memref<8x128xi32, #tpu.memory_space<vmem>>, %arg2: memref<32x32xbf16, #tpu.memory_space<vmem>>, %arg3: memref<32x1xf32, #tpu.memory_space<vmem>>, %arg4: memref<8x32xbf16, #tpu.memory_space<vmem>>, %arg5: memref<8x1xf32, #tpu.memory_space<vmem>>, %arg6: memref<8x128xf32, #tpu.memory_space<vmem>>) attributes {dimension_semantics = [#tpu.dimension_semantics<parallel>], iteration_bounds = array<i64: 1>, scalar_prefetch = 0 : i64, scratch_operands = 0 : i64, tpu.core_type = #tpu.core_type<tc>, window_params = [{transform_indices = @transform_0, window_bounds = array<i64: 8, 128>}, {pipeline_mode = #tpu.pipeline_mode<synchronous>, transform_indices = @transform_1, window_bounds = array<i64: 32, 32>}, {pipeline_mode = #tpu.pipeline_mode<synchronous>, transform_indices = @transform_2, window_bounds = array<i64: 32, 1>}, {pipeline_mode = #tpu.pipeline_mode<synchronous>, transform_indices = @transform_3, window_bounds = array<i64: 8, 32>}, {pipeline_mode = #tpu.pipeline_mode<synchronous>, transform_indices = @transform_4, window_bounds = array<i64: 8, 1>}, {transform_indices = @transform_5, window_bounds = array<i64: 8, 128>}]} {
    %c0 = arith.constant 0 : index
    %c0_0 = arith.constant 0 : index
    %0 = vector.load %arg1[%c0, %c0_0] : memref<8x128xi32, #tpu.memory_space<vmem>>, vector<8x128xi32>
    %1 = tpu.iota {dimensions = array<i32: 0>} : vector<32x128xi32>
    %cst = arith.constant 0.000000e+00 : f32
    %2 = vector.broadcast %cst : f32 to vector<32x128xf32>
    %3 = vector.extract_strided_slice %0 {offsets = [0, 0], sizes = [1, 128], strides = [1, 1]} : vector<8x128xi32> to vector<1x128xi32>
    %4 = vector.broadcast %3 : vector<1x128xi32> to vector<32x128xi32>
    %5 = arith.cmpi eq, %1, %4 : vector<32x128xi32>
    %6 = arith.extui %5 : vector<32x128xi1> to vector<32x128xi32>
    %7 = arith.sitofp %6 : vector<32x128xi32> to vector<32x128xf32>
    %8 = arith.addf %2, %7 : vector<32x128xf32>
    %9 = vector.extract_strided_slice %0 {offsets = [1, 0], sizes = [1, 128], strides = [1, 1]} : vector<8x128xi32> to vector<1x128xi32>
    %10 = vector.broadcast %9 : vector<1x128xi32> to vector<32x128xi32>
    %11 = arith.cmpi eq, %1, %10 : vector<32x128xi32>
    %12 = arith.extui %11 : vector<32x128xi1> to vector<32x128xi32>
    %13 = arith.sitofp %12 : vector<32x128xi32> to vector<32x128xf32>
    %14 = arith.addf %8, %13 : vector<32x128xf32>
    %15 = vector.extract_strided_slice %0 {offsets = [2, 0], sizes = [1, 128], strides = [1, 1]} : vector<8x128xi32> to vector<1x128xi32>
    %16 = vector.broadcast %15 : vector<1x128xi32> to vector<32x128xi32>
    %17 = arith.cmpi eq, %1, %16 : vector<32x128xi32>
    %18 = arith.extui %17 : vector<32x128xi1> to vector<32x128xi32>
    %19 = arith.sitofp %18 : vector<32x128xi32> to vector<32x128xf32>
    %20 = arith.addf %14, %19 : vector<32x128xf32>
    %21 = vector.extract_strided_slice %0 {offsets = [3, 0], sizes = [1, 128], strides = [1, 1]} : vector<8x128xi32> to vector<1x128xi32>
    %22 = vector.broadcast %21 : vector<1x128xi32> to vector<32x128xi32>
    %23 = arith.cmpi eq, %1, %22 : vector<32x128xi32>
    %24 = arith.extui %23 : vector<32x128xi1> to vector<32x128xi32>
    %25 = arith.sitofp %24 : vector<32x128xi32> to vector<32x128xf32>
    %26 = arith.addf %20, %25 : vector<32x128xf32>
    %27 = vector.extract_strided_slice %0 {offsets = [4, 0], sizes = [1, 128], strides = [1, 1]} : vector<8x128xi32> to vector<1x128xi32>
    %28 = vector.broadcast %27 : vector<1x128xi32> to vector<32x128xi32>
    %29 = arith.cmpi eq, %1, %28 : vector<32x128xi32>
    %30 = arith.extui %29 : vector<32x128xi1> to vector<32x128xi32>
    %31 = arith.sitofp %30 : vector<32x128xi32> to vector<32x128xf32>
    %32 = arith.addf %26, %31 : vector<32x128xf32>
    %33 = vector.extract_strided_slice %0 {offsets = [5, 0], sizes = [1, 128], strides = [1, 1]} : vector<8x128xi32> to vector<1x128xi32>
    %34 = vector.broadcast %33 : vector<1x128xi32> to vector<32x128xi32>
    %35 = arith.cmpi eq, %1, %34 : vector<32x128xi32>
    %36 = arith.extui %35 : vector<32x128xi1> to vector<32x128xi32>
    %37 = arith.sitofp %36 : vector<32x128xi32> to vector<32x128xf32>
    %38 = arith.addf %32, %37 : vector<32x128xf32>
    %39 = vector.extract_strided_slice %0 {offsets = [6, 0], sizes = [1, 128], strides = [1, 1]} : vector<8x128xi32> to vector<1x128xi32>
    %40 = vector.broadcast %39 : vector<1x128xi32> to vector<32x128xi32>
    %41 = arith.cmpi eq, %1, %40 : vector<32x128xi32>
    %42 = arith.extui %41 : vector<32x128xi1> to vector<32x128xi32>
    %43 = arith.sitofp %42 : vector<32x128xi32> to vector<32x128xf32>
    %44 = arith.addf %38, %43 : vector<32x128xf32>
    %45 = vector.extract_strided_slice %0 {offsets = [7, 0], sizes = [1, 128], strides = [1, 1]} : vector<8x128xi32> to vector<1x128xi32>
    %46 = vector.broadcast %45 : vector<1x128xi32> to vector<32x128xi32>
    %47 = arith.cmpi eq, %1, %46 : vector<32x128xi32>
    %48 = arith.extui %47 : vector<32x128xi1> to vector<32x128xi32>
    %49 = arith.sitofp %48 : vector<32x128xi32> to vector<32x128xf32>
    %50 = arith.addf %44, %49 : vector<32x128xf32>
    %c0_1 = arith.constant 0 : index
    %c0_2 = arith.constant 0 : index
    %51 = vector.load %arg2[%c0_1, %c0_2] : memref<32x32xbf16, #tpu.memory_space<vmem>>, vector<32x32xbf16>
    %52 = arith.truncf %50 : vector<32x128xf32> to vector<32x128xbf16>
    %cst_3 = arith.constant dense<0.000000e+00> : vector<32x128xf32>
    %53 = tpu.matmul %51, %52, %cst_3 {dimension_numbers = #tpu.dot_dimension_numbers<[1], [0], [0], [1], [0, 0, 1, 1], [], []>} : vector<32x32xbf16>, vector<32x128xbf16>, vector<32x128xf32> -> vector<32x128xf32>
    %c0_4 = arith.constant 0 : index
    %c0_5 = arith.constant 0 : index
    %54 = vector.load %arg3[%c0_4, %c0_5] : memref<32x1xf32, #tpu.memory_space<vmem>>, vector<32x1xf32>
    %55 = vector.broadcast %54 : vector<32x1xf32> to vector<32x128xf32>
    %56 = arith.addf %53, %55 : vector<32x128xf32>
    %cst_6 = arith.constant 0.000000e+00 : f32
    %57 = vector.broadcast %cst_6 : f32 to vector<32x128xf32>
    %58 = arith.maximumf %56, %57 : vector<32x128xf32>
    %c0_7 = arith.constant 0 : index
    %c0_8 = arith.constant 0 : index
    %59 = vector.load %arg4[%c0_7, %c0_8] : memref<8x32xbf16, #tpu.memory_space<vmem>>, vector<8x32xbf16>
    %60 = arith.truncf %58 : vector<32x128xf32> to vector<32x128xbf16>
    %cst_9 = arith.constant dense<0.000000e+00> : vector<8x128xf32>
    %61 = tpu.matmul %59, %60, %cst_9 {dimension_numbers = #tpu.dot_dimension_numbers<[1], [0], [0], [1], [0, 0, 1, 1], [], []>} : vector<8x32xbf16>, vector<32x128xbf16>, vector<8x128xf32> -> vector<8x128xf32>
    %c0_10 = arith.constant 0 : index
    %c0_11 = arith.constant 0 : index
    %62 = vector.load %arg5[%c0_10, %c0_11] : memref<8x1xf32, #tpu.memory_space<vmem>>, vector<8x1xf32>
    %63 = vector.broadcast %62 : vector<8x1xf32> to vector<8x128xf32>
    %64 = arith.addf %61, %63 : vector<8x128xf32>
    %c0_12 = arith.constant 0 : index
    %c0_13 = arith.constant 0 : index
    %65 = vector.load %arg6[%c0_12, %c0_13] : memref<8x128xf32, #tpu.memory_space<vmem>>, vector<8x128xf32>
    tpu.vector_store %arg6[%c0_12, %c0_13], %64 {strides = array<i32>} : memref<8x128xf32, #tpu.memory_space<vmem>>, vector<8x128xf32>,
    return
  }
  func.func @transform_0(%arg0: i32) -> (i32, i32) {
    %c0_i32 = arith.constant 0 : i32
    %c0_i32_0 = arith.constant 0 : i32
    return %c0_i32, %arg0 : i32, i32
  }
  func.func @transform_1(%arg0: i32) -> (i32, i32) {
    %c0_i32 = arith.constant 0 : i32
    %c0_i32_0 = arith.constant 0 : i32
    %c0_i32_1 = arith.constant 0 : i32
    return %c0_i32, %c0_i32_0 : i32, i32
  }
  func.func @transform_2(%arg0: i32) -> (i32, i32) {
    %c0_i32 = arith.constant 0 : i32
    %c0_i32_0 = arith.constant 0 : i32
    %c0_i32_1 = arith.constant 0 : i32
    return %c0_i32, %c0_i32_0 : i32, i32
  }
  func.func @transform_3(%arg0: i32) -> (i32, i32) {
    %c0_i32 = arith.constant 0 : i32
    %c0_i32_0 = arith.constant 0 : i32
    %c0_i32_1 = arith.constant 0 : i32
    return %c0_i32, %c0_i32_0 : i32, i32
  }
  func.func @transform_4(%arg0: i32) -> (i32, i32) {
    %c0_i32 = arith.constant 0 : i32
    %c0_i32_0 = arith.constant 0 : i32
    %c0_i32_1 = arith.constant 0 : i32
    return %c0_i32, %c0_i32_0 : i32, i32
  }
  func.func @transform_5(%arg0: i32) -> (i32, i32) {
    %c0_i32 = arith.constant 0 : i32
    %c0_i32_0 = arith.constant 0 : i32
    return %c0_i32, %arg0 : i32, i32
  }
}

</mosaic_0001>

<bundles_post_ra>
// kernel: tpu_custom_call.1
= control target key start
LH: loop header
LB: loop body
LE: loop exit
PB: predicated region body
PF: predicated region fallthrough
CT: control target
= control target key end

     0   :  { %v23_v1 = vlaneseq  ;;  %s527_s0 = inlined_call_operand.vmem [shape: s32[8,128], index: 0, kind: input, shape index: {}]   ;;  %s528_s1 = inlined_call_operand.vmem [shape: bf16[32,32], index: 1, kind: input, shape index: {}]   ;;  %s529_s2 = inlined_call_operand.vmem [shape: f32[32,1], index: 2, kind: input, shape index: {}]   ;;  %s530_s3 = inlined_call_operand.vmem [shape: bf16[8,32], index: 3, kind: input, shape index: {}]   ;;  %s531_s4 = inlined_call_operand.vmem [shape: f32[8,1], index: 4, kind: input, shape index: {}]   ;;  %s532_s5 = inlined_call_operand.hbm [shape: f32[8,128], index: 5, kind: output, shape index: {}]  }
   0x1   :  { %v22_v0 = vld [vmem:[%s527_s0] sm:$0xff] }
   0x2   :  { %10 = vsyncpa [#allocation3], 0  ;;  %v391_v2 = vshrl.u32 %v23_v1, 7  ;;  %v28_v3 = vperm.slane %v22_v0, 0  ;;  %v393_v4 = vperm.slane %v22_v0, 1  ;;  %v395_v5 = vperm.slane %v22_v0, 2 }
   0x3   :  { %v397_v6 = vperm.slane %v22_v0, 3  ;;  %v399_v7 = vperm.slane %v22_v0, 4  ;;  %v403_v10 = vperm.slane %v22_v0, 5  ;;  %v406_v11 = vperm.slane %v22_v0, 6  ;;  %s267_s11 = sshll.u32 %s532_s5, 4  ;;  %s268_s11 = int_to_ptr.hbm [resolvable:$true] %s267_s11 }
   0x4   :  { %v26_v8 = vadd.s32 16, %v391_v2  ;;  %v27_v9 = vadd.s32 24, %v391_v2  ;;  %vm29_vm0 = vcmp.eq.s32.totalorder %v391_v2, %v28_v3  ;;  %v408_v12 = vperm.slane %v22_v0, 7 }
   0x5   :  { %v411_v13 = vadd.s32 8, %v391_v2  ;;  %v355_v14 = vmov 0.0   ;;  %vm46_vm5 = vcmp.eq.s32.totalorder %v391_v2, %v393_v4  ;;  %vm63_vm8 = vcmp.eq.s32.totalorder %v391_v2, %v395_v5 }
   0x6   :  { %v276_v15 = vsel %vm29_vm0, 1.0, %v355_v14  ;;  %vm31_vm1 = vcmp.eq.s32.totalorder %v26_v8, %v28_v3  ;;  %vm32_vm2 = vcmp.eq.s32.totalorder %v27_v9, %v28_v3  ;;  %vm48_vm3 = vcmp.eq.s32.totalorder %v26_v8, %v393_v4 }
   0x7   :  { %vm49_vm4 = vcmp.eq.s32.totalorder %v27_v9, %v393_v4  ;;  %v278_v16 = vsel %vm31_vm1, 1.0, %v355_v14  ;;  %v279_v17 = vsel %vm32_vm2, 1.0, %v355_v14  ;;  %v282_v18 = vsel %vm48_vm3, 1.0, %v355_v14 }
   0x8   :  { %v283_v19 = vsel %vm49_vm4, 1.0, %v355_v14  ;;  %v60_v20 = vadd.f32 %v282_v18, %v278_v16  ;;  %vm65_vm6 = vcmp.eq.s32.totalorder %v26_v8, %v395_v5  ;;  %vm66_vm7 = vcmp.eq.s32.totalorder %v27_v9, %v395_v5  ;;  %v319_v18 = vld [vmem:[%s528_s1] sm:$0xff] }
   0x9   :  { %v61_v21 = vadd.f32 %v283_v19, %v279_v17  ;;  %vm80_vm9 = vcmp.eq.s32.totalorder %v391_v2, %v397_v6  ;;  %v286_v22 = vsel %vm65_vm6, 1.0, %v355_v14  ;;  %v287_v23 = vsel %vm66_vm7, 1.0, %v355_v14  ;;  %v320_v17 = vld [vmem:[%s528_s1 + $0x8] sm:$0xff] }
   0xa   :  { %vm82_vm10 = vcmp.eq.s32.totalorder %v26_v8, %v397_v6  ;;  %vm83_vm11 = vcmp.eq.s32.totalorder %v27_v9, %v397_v6  ;;  %v77_v24 = vadd.f32 %v286_v22, %v60_v20  ;;  %vm99_vm12 = vcmp.eq.s32.totalorder %v26_v8, %v399_v7  ;;  %v171_v19 = vld [vmem:[%s529_s2 + $0x8] sm:$0xff]  ;;  %v237_v20 = vld [vmem:[%s531_s4] sm:$0xff]  ;;  %s357_s4 = smov [#allocation2]  }
   0xb   :  { %v78_v25 = vadd.f32 %v287_v23, %v61_v21  ;;  %v290_v26 = vsel %vm82_vm10, 1.0, %v355_v14  ;;  %v291_v27 = vsel %vm83_vm11, 1.0, %v355_v14  ;;  %vm100_vm13 = vcmp.eq.s32.totalorder %v27_v9, %v399_v7  ;;  %s265_s8 = sshll.u32 %s357_s4, 4  ;;  %s266_s8 = int_to_ptr.vmem [resolvable:$true] %s265_s8 }
   0xc   :  { %vm116_vm14 = vcmp.eq.s32.totalorder %v26_v8, %v403_v10  ;;  %vm117_vm15 = vcmp.eq.s32.totalorder %v27_v9, %v403_v10  ;;  %v94_v28 = vadd.f32 %v290_v26, %v77_v24  ;;  %v294_v30 = vsel %vm99_vm12, 1.0, %v355_v14 }
   0xd   :  { %v95_v29 = vadd.f32 %v291_v27, %v78_v25  ;;  %v295_v31 = vsel %vm100_vm13, 1.0, %v355_v14  ;;  %v298_v32 = vsel %vm116_vm14, 1.0, %v355_v14  ;;  %v299_v33 = vsel %vm117_vm15, 1.0, %v355_v14 }
   0xe   :  { %vm133_vm0 = vcmp.eq.s32.totalorder %v26_v8, %v406_v11  ;;  %vm134_vm1 = vcmp.eq.s32.totalorder %v27_v9, %v406_v11  ;;  %v111_v34 = vadd.f32 %v294_v30, %v94_v28  ;;  %vm150_vm2 = vcmp.eq.s32.totalorder %v26_v8, %v408_v12  ;;  %v170_v8 = vld [vmem:[%s529_s2] sm:$0xff] }
   0xf   :  { %v112_v35 = vadd.f32 %v295_v31, %v95_v29  ;;  %v302_v36 = vsel %vm133_vm0, 1.0, %v355_v14  ;;  %v303_v37 = vsel %vm134_vm1, 1.0, %v355_v14  ;;  %vm151_vm3 = vcmp.eq.s32.totalorder %v27_v9, %v408_v12 }
  0x10   :  { %vm30_vm4 = vcmp.eq.s32.totalorder %v411_v13, %v28_v3  ;;  %vm47_vm6 = vcmp.eq.s32.totalorder %v411_v13, %v393_v4  ;;  %v128_v38 = vadd.f32 %v298_v32, %v111_v34  ;;  %v306_v40 = vsel %vm150_vm2, 1.0, %v355_v14 }
  0x11   :  { %v129_v39 = vadd.f32 %v299_v33, %v112_v35  ;;  %v307_v41 = vsel %vm151_vm3, 1.0, %v355_v14  ;;  %v277_v42 = vsel %vm30_vm4, 1.0, %v355_v14  ;;  %v280_v43 = vsel %vm46_vm5, 1.0, %v355_v14 }
  0x12   :  { %v281_v44 = vsel %vm47_vm6, 1.0, %v355_v14  ;;  %vm64_vm7 = vcmp.eq.s32.totalorder %v411_v13, %v395_v5  ;;  %v145_v45 = vadd.f32 %v302_v36, %v128_v38  ;;  %v58_v47 = vadd.f32 %v280_v43, %v276_v15 }
  0x13   :  { %v146_v46 = vadd.f32 %v303_v37, %v129_v39  ;;  %v59_v48 = vadd.f32 %v281_v44, %v277_v42  ;;  %v284_v49 = vsel %vm63_vm8, 1.0, %v355_v14  ;;  %v285_v50 = vsel %vm64_vm7, 1.0, %v355_v14  ;;  %v234_v39 = vld [vmem:[%s530_s3] sm:$0xf] }
  0x14   :  { %vm81_vm10 = vcmp.eq.s32.totalorder %v411_v13, %v397_v6  ;;  %v288_v51 = vsel %vm80_vm9, 1.0, %v355_v14  ;;  %v162_v52 = vadd.f32 %v306_v40, %v145_v45  ;;  %v75_v54 = vadd.f32 %v284_v49, %v58_v47 }
  0x15   :  { %v163_v53 = vadd.f32 %v307_v41, %v146_v46  ;;  %v76_v55 = vadd.f32 %v285_v50, %v59_v48  ;;  %v289_v56 = vsel %vm81_vm10, 1.0, %v355_v14  ;;  %vm97_vm5 = vcmp.eq.s32.totalorder %v391_v2, %v399_v7 }
  0x16   :  { %vm98_vm8 = vcmp.eq.s32.totalorder %v411_v13, %v399_v7  ;;  %vm114_vm11 = vcmp.eq.s32.totalorder %v391_v2, %v403_v10  ;;  %v92_v58 = vadd.f32 %v288_v51, %v75_v54  ;;  %v292_v60 = vsel %vm97_vm5, 1.0, %v355_v14  ;;  %v172_v7 = vld [vmem:[%s529_s2 + $0x10] sm:$0xff] }
  0x17   :  { %v169_v57 = vpack.c.bf16 %v163_v53, %v162_v52  ;;  %v93_v59 = vadd.f32 %v289_v56, %v76_v55  ;;  %v293_v61 = vsel %vm98_vm8, 1.0, %v355_v14  ;;  %vm115_vm9 = vcmp.eq.s32.totalorder %v411_v13, %v403_v10 }
  0x18   :  { %v296_v62 = vsel %vm114_vm11, 1.0, %v355_v14  ;;  %vm131_vm12 = vcmp.eq.s32.totalorder %v391_v2, %v406_v11  ;;  %v109_v63 = vadd.f32 %v292_v60, %v92_v58  ;;  %v297_v1 = vsel %vm115_vm9, 1.0, %v355_v14 }
  0x19   :  { %321 = vmatpush.bf16.msra.mxu2 %v169_v57  ;;  %217 = vmatpush.bf16.msra.mxu0 %v169_v57  ;;  %v110_v0 = vadd.f32 %v293_v61, %v93_v59  ;;  %vm132_vm13 = vcmp.eq.s32.totalorder %v411_v13, %v406_v11  ;;  %v300_v3 = vsel %vm131_vm12, 1.0, %v355_v14  ;;  %vm148_vm14 = vcmp.eq.s32.totalorder %v391_v2, %v408_v12 }
  0x1a   :  { %v301_v4 = vsel %vm132_vm13, 1.0, %v355_v14  ;;  %vm149_vm15 = vcmp.eq.s32.totalorder %v411_v13, %v408_v12  ;;  %v126_v5 = vadd.f32 %v296_v62, %v109_v63  ;;  %v304_v9 = vsel %vm148_vm14, 1.0, %v355_v14 }
  0x1b   :  { %v127_v6 = vadd.f32 %v297_v1, %v110_v0  ;;  %v305_v10 = vsel %vm149_vm15, 1.0, %v355_v14  ;;  %v356_v2 = vmov 0   ;;  %vm204_vm0 = vcmask 261120   ;;  %v173_v14 = vld [vmem:[%s529_s2 + $0x18] sm:$0xff] }
  0x1c   :  { %v143_v11 = vadd.f32 %v300_v3, %v126_v5  ;;  %326 = vset.pattern.permute.xlu0 %v356_v2  ;;  %327 = vset.pattern.permute.xlu1 %v356_v2 }
  0x1d   :  { %v144_v15 = vadd.f32 %v301_v4, %v127_v6  ;;  %186 = vperm.xlu0 %326, %v172_v7   ;;  %176 = vperm.xlu1 %327, %v170_v8  }
  0x1e   :  { %v160_v12 = vadd.f32 %v304_v9, %v143_v11  ;;  %328 = vset.pattern.permute.xlu2 %v356_v2 }
  0x1f   :  { %v161_v13 = vadd.f32 %v305_v10, %v144_v15  ;;  %240 = vperm.xlu2 %328, %v237_v20  }
  0x21   :  { %v168_v16 = vpack.c.bf16 %v161_v13, %v160_v12 }
  0x23   :  { %322 = vmatpush.bf16.msra.mxu2 %v168_v16  ;;  %218 = vmatpush.bf16.msra.mxu0 %v168_v16 }
  0x25   :  { %191 = vperm.xlu0 %326, %v173_v14   ;;  %181 = vperm.xlu1 %327, %v171_v19  }
  0x26   :  { %317 = vmatmul.msk.bf16.vlgmr.msra.gmra.mxu2 %vm204_vm0, %v320_v17  ;;  %316 = vmatmul.msk.bf16.vlgmr.msra.gmra.mxu0 %vm204_vm0, %v319_v18 }
  0x79   :  { %v241_v40 = vpop.permute.xlu2 %240 }
  0x8f   :  { %v177_v21 = vpop.permute.xlu1 %176  ;;  %v187_v23 = vpop.permute.xlu0 %186 }
  0x97   :  { %v182_v25 = vpop.permute.xlu1 %181  ;;  %v192_v28 = vpop.permute.xlu0 %191 }
  0xa3   :  { %v220_v22 = vpop.f32.mrf.mxu0 }
  0xa4   :  { %v221_v30 = vadd.f32 %v220_v22, %v177_v21 }
  0xa6   :  { %v230_v35 = vmax.f32 %v221_v30, 0.0 }
  0xa9   :  { %v225_v24 = vpop.f32.mrf.mxu2 }
  0xaa   :  { %v226_v27 = vadd.f32 %v225_v24, %v187_v23 }
  0xab   :  { %v222_v26 = vpop.f32.mrf.mxu0 }
  0xac   :  { %v223_v31 = vadd.f32 %v222_v26, %v182_v25  ;;  %v232_v33 = vmax.f32 %v226_v27, 0.0 }
  0xae   :  { %v231_v36 = vmax.f32 %v223_v31, 0.0 }
  0xb0   :  { %v235_v38 = vpack.c.bf16 %v231_v36, %v230_v35 }
  0xb1   :  { %v227_v29 = vpop.f32.mrf.mxu2 }
  0xb2   :  { %v228_v32 = vadd.f32 %v227_v29, %v192_v28 }
  0xb4   :  { %v233_v34 = vmax.f32 %v228_v32, 0.0 }
  0xb6   :  { %v236_v37 = vpack.c.bf16 %v233_v34, %v232_v33 }
  0xb8   :  { %252 = vmatpush.bf16.msra.mxu1 %v236_v37 }
  0xbc   :  { %253 = vmatpush.bf16.msra.mxu1 %v235_v38 }
  0xbf   :  { %318 = vmatmul.msk.bf16.vlgmr.msra.gmra.mxu1 %vm204_vm0, %v234_v39 }
 0x13c   :  { %v255_v41 = vpop.f32.mrf.mxu1 }
 0x13d   :  { %v256_v42 = vadd.f32 %v255_v41, %v241_v40 }
 0x13f   :  { %259 = vst [vmem:[#allocation2] sm:$0xff] %v256_v42 }
 0x140   :  { %270 = dma.vmem_to_hbm [thread:$0]  %s266_s8, 128, %s268_s11, [#allocation3]  }
 0x144   :  { %v257_v43 = vpop.f32.mrf.mxu1 }
 0x145   :  { %353 = dma.done.wait [#allocation3], 128  }
 0x146   :  { %354 = vsyncadd [#allocation3], 4294967168 }
 0x147   :  { %275 = vsyncpa [#allocation3], 1 }

</bundles_post_ra>
